<compile_context>
chip_gen: v6e
topology: v6e:2x2x1
jax: 0.10.0
libtpu: 0.0.40
codegen_flags: <defaults>
</compile_context>

<pallas_src>
import functools

import jax
import jax.numpy as jnp
from jax.experimental import pallas as pl
from jax.experimental.pallas import tpu as pltpu


def _linear_pooler_kernel(cls_ref, w_ref, b_ref, o_ref):
    # cls_ref: [tb, D] activations; w_ref: [D, O] weight (bf16 by default);
    # b_ref: [1, O] f32 bias; o_ref: [tb, O] in the activation dtype.
    w = w_ref[...]
    x = cls_ref[...]
    if x.dtype != w.dtype:
        x = x.astype(w.dtype)                    # e.g. f32 acts -> bf16 for the MXU
    acc = jnp.dot(x, w, preferred_element_type=jnp.float32)   # MXU, f32 accumulate
    o_ref[...] = (acc + b_ref[...]).astype(o_ref.dtype)       # f32 bias, cast once


def _round_up(x, m):
    return (x + m - 1) // m * m


@functools.partial(jax.jit, static_argnames=("block_b",))
def linear_pooler(q, w_dO, b_1O, *, block_b=512):
    """CLS pooling + Linear.

    q:    [B, S, D] activations.
    w_dO: [D, O] weight, i.e. (nn.Linear weight [O, D]).T, already in compute dtype.
    b_1O: [1, O] float32 bias.
    """
    B, S, D = q.shape
    if w_dO.ndim != 2 or w_dO.shape[0] != D:
        raise ValueError(
            f"weight must be pre-transposed to [D={D}, O], got {w_dO.shape}; "
            "pass nn.Linear.weight.T (see LinearPoolerJax.convert_torch_params).")
    O = w_dO.shape[1]
    if b_1O.shape != (1, O):
        raise ValueError(f"bias must have shape (1, {O}), got {b_1O.shape}")

    # --- CLS extraction without an extra HBM round trip ------------------------
    # Collapsing (B, S, D) -> (B, S*D) is a pure bitcast for a contiguous
    # row-major array, so the pallas_call reads the original activation buffer;
    # the (tb, D) block at column-block 0 is exactly the CLS feature slab.  This
    # needs the block lane width (D) to be a multiple of 128; otherwise fall back
    # to an explicit slice (one [B, D] intermediate, but always legal).
    if D % 128 == 0:
        cls_arr = q.reshape(B, S * D)
    else:
        cls_arr = q[:, 0, :]

    # --- batch tile -------------------------------------------------------------
    # Full batch when tiny; otherwise multiples of 16 rows (f32 sublane 8 / bf16
    # sublane 16), and >= 2 grid steps when B > 16 so both v7x TCs get a tile.
    if B <= 16:
        tb = B
    else:
        tb = min(_round_up(block_b, 16), _round_up(pl.cdiv(B, 2), 16))
    grid = (pl.cdiv(B, tb),)

    act_sz = jnp.dtype(q.dtype).itemsize
    w_sz = jnp.dtype(w_dO.dtype).itemsize

    # VMEM budget: double-buffered cls/out tiles + resident weight (budget two
    # buffers) + bias + headroom; clamp to [32 MiB, 64 MiB] for v5e..v7x.
    vmem_est = (2 * tb * D * act_sz + 2 * tb * O * act_sz
                + 2 * D * O * w_sz + 2 * O * 4 + (2 << 20))
    vmem_limit = max(32 << 20, min(vmem_est, 64 << 20))
    # TODO(synk): for very large D*O (>= ~2k x 2k) add an O grid axis instead of
    # keeping the full weight resident.

    return pl.pallas_call(
        _linear_pooler_kernel,
        out_shape=jax.ShapeDtypeStruct((B, O), q.dtype),
        grid=grid,
        in_specs=[
            pl.BlockSpec((tb, D), lambda i: (i, 0)),    # CLS rows (column-block 0)
            pl.BlockSpec((D, O), lambda i: (0, 0)),     # weight: resident across tiles
            pl.BlockSpec((1, O), lambda i: (0, 0)),     # f32 bias: resident
        ],
        out_specs=pl.BlockSpec((tb, O), lambda i: (i, 0)),  # lane-dense when O%128==0
        compiler_params=pltpu.CompilerParams(
            dimension_semantics=("parallel",),          # shard batch tiles across TCs (v7x)
            vmem_limit_bytes=vmem_limit,
        ),
        cost_estimate=pl.CostEstimate(
            flops=2 * B * D * O,
            transcendentals=0,
            bytes_accessed=B * D * act_sz + D * O * w_sz + O * 4 + B * O * act_sz,
        ),
    )(cls_arr, w_dO, b_1O)


class LinearPoolerJax:
    """Forward-only JAX mirror of the PyTorch LinearPooler.

    Dtype policy: weight stored once, pre-transposed to [D, O], in `weight_dtype`
    (bf16 default -> native bf16 MXU path, f32 accumulation); bias stored in f32
    and added after the MXU; outputs are in the activation dtype.  bf16 weights
    drift ~1e-3 relative vs a full-f32 reference.
    """
    # TODO(synk): load()/save_pooler() checkpoint I/O has no kernel equivalent.

    def __init__(self, input_dim=768, output_dim=768, tied=True, key=None,
                 weight_dtype=jnp.bfloat16):
        if key is None:
            key = jax.random.PRNGKey(0)
        kw, kb = jax.random.split(key)
        bound = 1.0 / (input_dim ** 0.5)                 # nn.Linear default init range
        # [D, O] == (nn.Linear weight [O, D]).T — transposed + cast exactly once.
        self.w_q = jax.random.uniform(
            kw, (input_dim, output_dim), jnp.float32, -bound, bound).astype(weight_dtype)
        self.b_q = jax.random.uniform(kb, (1, output_dim), jnp.float32, -bound, bound)
        if tied:
            self.w_p, self.b_p = self.w_q, self.b_q
        else:
            kw2, kb2 = jax.random.split(kb)
            self.w_p = jax.random.uniform(
                kw2, (input_dim, output_dim), jnp.float32, -bound, bound).astype(weight_dtype)
            self.b_p = jax.random.uniform(kb2, (1, output_dim), jnp.float32, -bound, bound)

    @staticmethod
    def convert_torch_params(weight_OD, bias_O, weight_dtype=jnp.bfloat16):
        """nn.Linear layout ([O, D] weight, [O] bias) -> kernel layout ([D, O], [1, O] f32)."""
        w = jnp.asarray(weight_OD).T.astype(weight_dtype)
        b = jnp.asarray(bias_O, dtype=jnp.float32).reshape(1, -1)
        return w, b

    def __call__(self, q=None, p=None):
        if q is not None:
            return linear_pooler(q, self.w_q, self.b_q)
        elif p is not None:
            return linear_pooler(p, self.w_p, self.b_p)
        else:
            raise ValueError("either q or p must be provided")


if __name__ == "__main__":
    key = jax.random.PRNGKey(0)
    k_q, k_params, k_p = jax.random.split(key, 3)

    def _ref(x, w, b):  # plain-JAX reference at matching (bf16 x bf16 -> f32) precision
        cls = x[:, 0, :].astype(w.dtype)
        return (jnp.dot(cls, w, preferred_element_type=jnp.float32) + b).astype(x.dtype)

    # Case 1: lane-aligned hidden dim -> fused CLS path (no [B, D] intermediate).
    B, S, D, O = 2, 8, 128, 128
    q = jax.random.normal(k_q, (B, S, D), jnp.float32)
    pooler = LinearPoolerJax(input_dim=D, output_dim=O, tied=True, key=k_params)
    out = pooler(q=q)
    jax.block_until_ready(out)
    assert out.shape == (B, O)
    assert jnp.allclose(out, _ref(q, pooler.w_q, pooler.b_q), atol=1e-3, rtol=1e-3)

    # Case 2: tiny unaligned hidden dim -> fallback slice path, untied params.
    B2, S2, D2, O2 = 3, 8, 32, 32
    p = jax.random.normal(k_p, (B2, S2, D2), jnp.float32)
    pooler2 = LinearPoolerJax(input_dim=D2, output_dim=O2, tied=False, key=k_params)
    out2 = pooler2(p=p)
    jax.block_until_ready(out2)
    assert out2.shape == (B2, O2)
    assert jnp.allclose(out2, _ref(p, pooler2.w_p, pooler2.b_p), atol=1e-3, rtol=1e-3)

    print("KERNEL_OK")
</pallas_src>

<mosaic_0001>
module attributes {stable_mosaic.version = 11 : i64} {
  func.func @_linear_pooler_kernel(%arg0: i32, %arg1: memref<2x128xf32, #tpu.memory_space<vmem>>, %arg2: memref<128x128xbf16, #tpu.memory_space<vmem>>, %arg3: memref<1x128xf32, #tpu.memory_space<vmem>>, %arg4: memref<2x128xf32, #tpu.memory_space<vmem>>) attributes {dimension_semantics = [#tpu.dimension_semantics<parallel>], iteration_bounds = array<i64: 1>, scalar_prefetch = 0 : i64, scratch_operands = 0 : i64, tpu.core_type = #tpu.core_type<tc>, window_params = [{transform_indices = @transform_0, window_bounds = array<i64: 2, 128>}, {pipeline_mode = #tpu.pipeline_mode<synchronous>, transform_indices = @transform_1, window_bounds = array<i64: 128, 128>}, {pipeline_mode = #tpu.pipeline_mode<synchronous>, transform_indices = @transform_2, window_bounds = array<i64: 1, 128>}, {transform_indices = @transform_3, window_bounds = array<i64: 2, 128>}]} {
    %c0 = arith.constant 0 : index
    %c0_0 = arith.constant 0 : index
    %0 = vector.load %arg2[%c0, %c0_0] : memref<128x128xbf16, #tpu.memory_space<vmem>>, vector<128x128xbf16>
    %c0_1 = arith.constant 0 : index
    %c0_2 = arith.constant 0 : index
    %1 = vector.load %arg1[%c0_1, %c0_2] : memref<2x128xf32, #tpu.memory_space<vmem>>, vector<2x128xf32>
    %2 = arith.truncf %1 : vector<2x128xf32> to vector<2x128xbf16>
    %cst = arith.constant dense<0.000000e+00> : vector<2x128xf32>
    %3 = tpu.matmul %2, %0, %cst {dimension_numbers = #tpu.dot_dimension_numbers<[1], [0], [0], [1], [0, 0, 1, 1], [], []>} : vector<2x128xbf16>, vector<128x128xbf16>, vector<2x128xf32> -> vector<2x128xf32>
    %c0_3 = arith.constant 0 : index
    %c0_4 = arith.constant 0 : index
    %4 = vector.load %arg3[%c0_3, %c0_4] : memref<1x128xf32, #tpu.memory_space<vmem>>, vector<1x128xf32>
    %5 = vector.broadcast %4 : vector<1x128xf32> to vector<2x128xf32>
    %6 = arith.addf %3, %5 : vector<2x128xf32>
    %c0_5 = arith.constant 0 : index
    %c0_6 = arith.constant 0 : index
    %7 = vector.load %arg4[%c0_5, %c0_6] : memref<2x128xf32, #tpu.memory_space<vmem>>, vector<2x128xf32>
    tpu.vector_store %arg4[%c0_5, %c0_6], %6 {strides = array<i32>} : memref<2x128xf32, #tpu.memory_space<vmem>>, vector<2x128xf32>,
    return
  }
  func.func @transform_0(%arg0: i32) -> (i32, i32) {
    %c0_i32 = arith.constant 0 : i32
    %c0_i32_0 = arith.constant 0 : i32
    return %arg0, %c0_i32 : i32, i32
  }
  func.func @transform_1(%arg0: i32) -> (i32, i32) {
    %c0_i32 = arith.constant 0 : i32
    %c0_i32_0 = arith.constant 0 : i32
    %c0_i32_1 = arith.constant 0 : i32
    return %c0_i32, %c0_i32_0 : i32, i32
  }
  func.func @transform_2(%arg0: i32) -> (i32, i32) {
    %c0_i32 = arith.constant 0 : i32
    %c0_i32_0 = arith.constant 0 : i32
    %c0_i32_1 = arith.constant 0 : i32
    return %c0_i32, %c0_i32_0 : i32, i32
  }
  func.func @transform_3(%arg0: i32) -> (i32, i32) {
    %c0_i32 = arith.constant 0 : i32
    %c0_i32_0 = arith.constant 0 : i32
    return %arg0, %c0_i32 : i32, i32
  }
}

</mosaic_0001>

<bundles_post_ra>
// kernel: linear_pooler.1
= control target key start
LH: loop header
LB: loop body
LE: loop exit
PB: predicated region body
PF: predicated region fallthrough
CT: control target
= control target key end

     0   :  { %8 = vsyncpa [#allocation3], 0  ;;  %s293_s0 = inlined_call_operand.vmem [shape: f32[2,1024], index: 0, kind: input, shape index: {}]   ;;  %s294_s1 = inlined_call_operand.hbm [shape: bf16[128,128], index: 1, kind: input, shape index: {}]   ;;  %s295_s2 = inlined_call_operand.vmem [shape: f32[1,128], index: 2, kind: input, shape index: {}]   ;;  %s296_s3 = inlined_call_operand.hbm [shape: f32[2,128], index: 3, kind: output, shape index: {}]  }
   0x1   :  { %9 = vsyncpa [#allocation4], 0  ;;  %s255_s12 = smov [#allocation2]  }
   0x2   :  { %s17_s13 = sshll.u32 %s255_s12, 4  ;;  %s18_s13 = int_to_ptr.vmem [resolvable:$true] %s17_s13 }
   0x3   :  { %s219_s14 = scalar_lea.vmem %s18_s13, 1024  ;;  %p224_p1 = scmp.lt.s32.totalorder %s18_s13, %s18_s13 }
   0x4   :  { %p220_p0 = scmp.ne.s32.totalorder %s18_s13, %s219_s14  ;;  %p225_p2 = scmp.lt.s32.totalorder %s219_s14, %s219_s14 }
   0x6   :  { %p226_p3 = por %p225_p2, %p224_p1 }
   0x8   :  { %p227_p4 = pnand %p226_p3, %p220_p0 }
   0xa   :  { %230 = shalt.err (!%p227_p4)
}
   0xb   :  { %s256_s15 = smov 64   ;;  %s257_s16 = smov 4  }
   0xc   :  { %23 = dma.hbm_to_vmem [thread:$0]  %s294_s1, 1024, %s18_s13, [#allocation3], %s256_s15, %s256_s15, %s257_s16  }
   0xd   :  { %251 = dma.done.wait [#allocation3], 1024  }
   0xe   :  { %252 = vsyncadd [#allocation3], 4294966272  ;;  %v258_v0 = vmov 0.0   ;;  %vm259_vm0 = vmmov 0   ;;  %v203_v1 = vld [vmem:[#allocation2 + $0x38] sm:$0xff]   ;;  %v204_v2 = vld [vmem:[#allocation2 + $0x30] sm:$0xff]  }
   0xf   :  { %177 = vmatprep.subr.bf16.mxu0 %v258_v0  ;;  %193 = vmatprep.mubr.msk.bf16.mxu0 %vm259_vm0, %v258_v0  ;;  %v205_v3 = vld [vmem:[#allocation2 + $0x28] sm:$0xff]   ;;  %v206_v4 = vld [vmem:[#allocation2 + $0x20] sm:$0xff]   ;;  %v207_v5 = vld [vmem:[#allocation2 + $0x18] sm:$0xff]   ;;  %s260_s22 = smov [#allocation5]  }
  0x10   :  { %178 = vmatpush3.bf16.msra.mxu0 %v203_v1  ;;  %v208_v6 = vld [vmem:[#allocation2 + $0x10] sm:$0xff]   ;;  %v209_v7 = vld [vmem:[#allocation2 + $0x8] sm:$0xff]   ;;  %v210_v8 = vld [vmem:[#allocation2] sm:$0xff]   ;;  %s150_s23 = sshll.u32 %s260_s22, 4  ;;  %s151_s23 = int_to_ptr.vmem [resolvable:$true] %s150_s23 }
  0x11   :  { %179 = vmatprep.subr.bf16.mxu0 %v258_v0  ;;  %v46_v9 = vld [vmem:[%s293_s0] sm:$0x3]  ;;  %s231_s24 = scalar_lea.vmem %s151_s23, 32  ;;  %p236_p6 = scmp.lt.s32.totalorder %s151_s23, %s151_s23 }
  0x12   :  { %v47_v10 = vpack.c.bf16 %v46_v9, %v46_v9  ;;  %v159_v11 = vld [vmem:[%s295_s2] ss:$0 sm:$0xff]  ;;  %p232_p5 = scmp.ne.s32.totalorder %s151_s23, %s231_s24  ;;  %p237_p7 = scmp.lt.s32.totalorder %s231_s24, %s231_s24 }
  0x14   :  { %180 = vmatpush3.bf16.msra.mxu0 %v204_v2  ;;  %p238_p8 = por %p237_p7, %p236_p6 }
  0x15   :  { %181 = vmatprep.subr.bf16.mxu0 %v258_v0 }
  0x16   :  { %p239_p9 = pnand %p238_p8, %p232_p5 }
  0x18   :  { %182 = vmatpush3.bf16.msra.mxu0 %v205_v3 }
  0x19   :  { %183 = vmatprep.subr.bf16.mxu0 %v258_v0 }
  0x1c   :  { %184 = vmatpush3.bf16.msra.mxu0 %v206_v4 }
  0x1d   :  { %185 = vmatprep.subr.bf16.mxu0 %v258_v0 }
  0x20   :  { %186 = vmatpush3.bf16.msra.mxu0 %v207_v5 }
  0x21   :  { %187 = vmatprep.subr.bf16.mxu0 %v258_v0 }
  0x24   :  { %188 = vmatpush3.bf16.msra.mxu0 %v208_v6 }
  0x25   :  { %189 = vmatprep.subr.bf16.mxu0 %v258_v0 }
  0x28   :  { %190 = vmatpush3.bf16.msra.mxu0 %v209_v7 }
  0x29   :  { %191 = vmatprep.subr.bf16.mxu0 %v258_v0 }
  0x2c   :  { %192 = vmatpush3.bf16.msra.mxu0 %v210_v8 }
  0x2f   :  { %194 = vmatmul.mubr.bf16.vlgmr.msra.gmra.mxu0 %v47_v10 }
  0xef   :  { %v137_v12 = vpop.f32.mrf.mxu0 }
  0xf0   :  { %v138_v13 = vadd.f32 %v159_v11, %v137_v12 }
  0xf1   :  { %v195_v14 = vpop.f32.mrf.mxu0 }
  0xf2   :  { %143 = vst [vmem:[#allocation5] sm:$0x3] %v138_v13 }
  0xf3   :  { %v140_v15 = vpop.f32.mrf.mxu0 }
  0xf4   :  { %242 = shalt.err (!%p239_p9)
}
  0xf5   :  { %153 = dma.vmem_to_hbm [thread:$0]  %s151_s23, 32, %s296_s3, [#allocation4]   ;;  %v196_v16 = vpop.f32.mrf.mxu0 }
  0xf6   :  { %253 = dma.done.wait [#allocation4], 32  }
  0xf7   :  { %254 = vsyncadd [#allocation4], 4294967264 }
  0xf8   :  { %157 = vsyncpa [#allocation3], 1 }
  0xf9   :  { %158 = vsyncpa [#allocation4], 1 }

</bundles_post_ra>
